<compile_context>
chip_gen: v7x
topology: tpu7x:2x2x1
jax: 0.10.0
libtpu: 0.0.40
codegen_flags: <defaults>
</compile_context>

<pallas_src>
import numpy as np
import jax
import jax.numpy as jnp
from jax.experimental import pallas as pl
from jax.experimental.pallas import tpu as pltpu

TWO_PI = 2.0 * np.pi


def _round_up(x, m):
    return ((x + m - 1) // m) * m


# ----------------------------------------------------------------------------
# Pallas kernel: one (batch b, spatial tile m) step.  Transposed layout:
#   g_ref    (2, TM)  f32   rows = [2*pi*gx, 2*pi*gy] for TM pixels
#   fp_ref   (C, 3)   f32   cols = [fx, fy, 2*pi*phase]   (per-sample)
#   wmat_ref (O, C)   bf16  per-sample weight with amps / exp(.5) /
#                           exp(1-1/density) / 1/sqrt(FC) folded in
#   o_ref    (O, TM)        lane-dense output tile (lane dim = spatial)
# ----------------------------------------------------------------------------
def _synth_input_kernel(g_ref, fp_ref, wmat_ref, o_ref):
    gx = g_ref[0:1, :]                        # (1, TM)  sublane-broadcast
    gy = g_ref[1:2, :]                        # (1, TM)
    fx = fp_ref[:, 0:1]                       # (C, 1)
    fy = fp_ref[:, 1:2]                       # (C, 1)
    ph = fp_ref[:, 2:3]                       # (C, 1)
    arg = fx * gx + fy * gy + ph              # (C, TM) f32 on the VPU
    feat = jnp.sin(arg).astype(wmat_ref.dtype)        # EUP sin, bf16 MXU operand
    o_ref[...] = jnp.dot(wmat_ref[...], feat,
                         preferred_element_type=jnp.float32).astype(o_ref.dtype)


# ----------------------------------------------------------------------------
# Tile / VMEM sizing helpers (derived from the actual per-step block sizes).
# ----------------------------------------------------------------------------
def _step_bytes(tm, c, o, out_itemsize, mxu_itemsize):
    out_b = 2 * o * tm * out_itemsize           # double-buffered output block
    coord_b = 2 * 2 * tm * 4                    # double-buffered coords
    wmat_b = 2 * o * c * mxu_itemsize           # per-sample weight block
    fp_b = 2 * c * 3 * 4                        # per-sample freqs/phase block
    feat_b = c * tm * (4 + mxu_itemsize)        # f32 arg + bf16 MXU copy
    return out_b + coord_b + wmat_b + fp_b + feat_b


def _pick_spatial_tile(hw, c, o, out_itemsize, mxu_itemsize,
                       max_tile=2048, vmem_budget=24 * 1024 * 1024):
    """Spatial tile TM: multiple of 128, as large as the VMEM budget allows."""
    tm = min(_round_up(hw, 128), max_tile)
    while tm > 128 and _step_bytes(tm, c, o, out_itemsize, mxu_itemsize) > vmem_budget:
        tm = max(128, (tm // 2) // 128 * 128)
    return tm


def _vmem_limit(tm, c, o, out_itemsize, mxu_itemsize):
    # 2x headroom for Mosaic internal scratch; clamp well under v7x's 64 MiB.
    need = 2 * _step_bytes(tm, c, o, out_itemsize, mxu_itemsize)
    return int(min(max(need, 16 * 1024 * 1024), 48 * 1024 * 1024))


# ----------------------------------------------------------------------------
# Parameters (mirrors SynthesisInput.__init__ / FullyConnectedLayer init)
# ----------------------------------------------------------------------------
def init_params(key, *, w_dim, freq_channels, channels, bandwidth):
    k1, k2, k3, k4 = jax.random.split(key, 4)
    freqs = jax.random.normal(k1, (channels, 2), dtype=jnp.float32)
    radii = jnp.sqrt(jnp.sum(freqs ** 2, axis=1, keepdims=True))
    freqs = freqs / (radii * jnp.exp(radii ** 2 / 4.0))   # radii * exp(r^2)^0.25
    freqs = freqs * bandwidth
    phases = jax.random.uniform(k2, (channels,), dtype=jnp.float32) - 0.5
    weight = jax.random.normal(k3, (channels, freq_channels), dtype=jnp.float32)
    # Module initializes affine.weight to zeros (weight_init=0); use small
    # random values here so the rotation/translation path is exercised.
    affine_weight = jax.random.normal(k4, (4, w_dim), dtype=jnp.float32) * 0.1
    affine_bias = jnp.asarray([1.0, 0.0, 0.0, 0.0], dtype=jnp.float32)
    transform = jnp.eye(3, dtype=jnp.float32)
    return dict(freqs=freqs, phases=phases, weight=weight,
                affine_weight=affine_weight, affine_bias=affine_bias,
                transform=transform)


# ----------------------------------------------------------------------------
# Forward wrapper (glue + pallas_call)
# ----------------------------------------------------------------------------
def synthesis_input_forward(w, params, *, size, sampling_rate, bandwidth,
                            density=1.0, mxu_dtype=jnp.bfloat16):
    freqs = params["freqs"]; phases = params["phases"]; weight = params["weight"]
    affine_w = params["affine_weight"]; affine_b = params["affine_bias"]
    transform = params["transform"]

    B, w_dim = w.shape
    C = freqs.shape[0]
    O, FC = weight.shape
    assert FC == C, "freq_channels must equal the number of frequency rows"
    sz = np.broadcast_to(np.asarray(size), [2])
    W_sz, H_sz = int(sz[0]), int(sz[1])
    HW = H_sz * W_sz

    # ---- per-sample transform glue (tiny: B x 3 x 3), plain JAX -------------
    t = jnp.dot(w, (affine_w * jnp.float32(1.0 / np.sqrt(w_dim))).T) + affine_b
    t = t / jnp.linalg.norm(t[:, :2], axis=1, keepdims=True)
    eye3 = jnp.eye(3, dtype=jnp.float32)
    m_r = jnp.tile(eye3[None], (B, 1, 1))
    m_r = m_r.at[:, 0, 0].set(t[:, 0]).at[:, 0, 1].set(-t[:, 1])
    m_r = m_r.at[:, 1, 0].set(t[:, 1]).at[:, 1, 1].set(t[:, 0])
    m_t = jnp.tile(eye3[None], (B, 1, 1))
    m_t = m_t.at[:, 0, 2].set(-t[:, 2]).at[:, 1, 2].set(-t[:, 3])
    transforms = m_r @ m_t @ transform[None]

    phases_b = phases[None, :] + jnp.squeeze(freqs[None] @ transforms[:, :2, 2:], -1)
    freqs_b = freqs[None] @ transforms[:, :2, :2]                       # (B, C, 2)
    # Same denominator as the PyTorch module; bandwidth == sampling_rate/2
    # would divide by zero there too.
    amps = jnp.clip(
        1.0 - (jnp.linalg.norm(freqs_b, axis=2) - bandwidth)
        / (sampling_rate / 2.0 - bandwidth), 0.0, 1.0)                  # (B, C)

    # ---- fold all scalar gains + per-channel amplitude into the weight ------
    gain = np.float32(np.exp(0.5) * np.exp(1.0 - 1.0 / density) / np.sqrt(FC))
    wmat_b = (weight[None, :, :] * (amps * gain)[:, None, :]).astype(mxu_dtype)  # (B,O,C)

    # ---- per-sample frequency / phase columns (2*pi folded in) --------------
    fparams = jnp.concatenate(
        [freqs_b, (phases_b * jnp.float32(TWO_PI))[:, :, None]], axis=2
    ).astype(jnp.float32)                                               # (B, C, 3)

    # ---- tile sizing ---------------------------------------------------------
    out_itemsize = jnp.dtype(w.dtype).itemsize
    mxu_itemsize = jnp.dtype(mxu_dtype).itemsize
    TM = _pick_spatial_tile(HW, C, O, out_itemsize, mxu_itemsize)
    HW_pad = _round_up(HW, TM)

    # ---- static affine_grid coordinates (align_corners=False), 2*pi folded --
    gx = ((2.0 * np.arange(W_sz) + 1.0) / W_sz - 1.0) * (0.5 * W_sz / sampling_rate)
    gy = ((2.0 * np.arange(H_sz) + 1.0) / H_sz - 1.0) * (0.5 * H_sz / sampling_rate)
    coords_np = np.zeros((2, HW_pad), dtype=np.float32)
    coords_np[0, :HW] = np.tile(gx, H_sz) * TWO_PI       # pixel p = h*W + w
    coords_np[1, :HW] = np.repeat(gy, W_sz) * TWO_PI
    coords = jnp.asarray(coords_np)

    grid = (B, HW_pad // TM)
    # NOTE(v7x): both axes are "parallel"; with tiny/odd B Mosaic may still
    # split the (usually much longer) spatial axis across the two TensorCores.
    out_flat = pl.pallas_call(
        _synth_input_kernel,
        out_shape=jax.ShapeDtypeStruct((B, O, HW_pad), w.dtype),
        grid=grid,
        in_specs=[
            pl.BlockSpec((2, TM), lambda b, m: (0, m)),          # coords (shared)
            pl.BlockSpec((None, C, 3), lambda b, m: (b, 0, 0)),  # freqs+phase (per-b)
            pl.BlockSpec((None, O, C), lambda b, m: (b, 0, 0)),  # weight*amps (per-b)
        ],
        out_specs=pl.BlockSpec((None, O, TM), lambda b, m: (b, 0, m)),
        compiler_params=pltpu.CompilerParams(
            dimension_semantics=("parallel", "parallel"),
            vmem_limit_bytes=_vmem_limit(TM, C, O, out_itemsize, mxu_itemsize)),
        cost_estimate=pl.CostEstimate(
            flops=2 * B * HW_pad * C * O,
            transcendentals=B * HW_pad * C,
            bytes_accessed=(B * HW_pad * O * out_itemsize
                            + B * O * C * mxu_itemsize
                            + B * C * 3 * 4
                            + 2 * HW_pad * 4)),
    )(coords, fparams, wmat_b)

    # Free layout plumbing: (B, O, HW) -> (B, O, H, W).  No transpose needed.
    return out_flat[:, :, :HW].reshape(B, O, H_sz, W_sz)


# ----------------------------------------------------------------------------
# Pure-JAX reference that mirrors the PyTorch forward literally.
# ----------------------------------------------------------------------------
def _reference_forward(w, params, *, size, sampling_rate, bandwidth, density=1.0):
    freqs = params["freqs"]; phases = params["phases"]; weight = params["weight"]
    affine_w = params["affine_weight"]; affine_b = params["affine_bias"]
    transform = params["transform"]
    B, w_dim = w.shape
    O, FC = weight.shape
    sz = np.broadcast_to(np.asarray(size), [2])
    W_sz, H_sz = int(sz[0]), int(sz[1])

    t = w @ (affine_w * (1.0 / np.sqrt(w_dim))).T + affine_b
    t = t / jnp.linalg.norm(t[:, :2], axis=1, keepdims=True)
    eye3 = jnp.eye(3, dtype=jnp.float32)
    m_r = jnp.tile(eye3[None], (B, 1, 1))
    m_r = m_r.at[:, 0, 0].set(t[:, 0]).at[:, 0, 1].set(-t[:, 1])
    m_r = m_r.at[:, 1, 0].set(t[:, 1]).at[:, 1, 1].set(t[:, 0])
    m_t = jnp.tile(eye3[None], (B, 1, 1))
    m_t = m_t.at[:, 0, 2].set(-t[:, 2]).at[:, 1, 2].set(-t[:, 3])
    transforms = m_r @ m_t @ transform[None]

    phases_b = phases[None, :] + jnp.squeeze(freqs[None] @ transforms[:, :2, 2:], -1)
    freqs_b = freqs[None] @ transforms[:, :2, :2]
    amps = jnp.clip(1.0 - (jnp.linalg.norm(freqs_b, axis=2) - bandwidth)
                    / (sampling_rate / 2.0 - bandwidth), 0.0, 1.0)

    gx = ((2.0 * jnp.arange(W_sz, dtype=jnp.float32) + 1.0) / W_sz - 1.0) \
        * (0.5 * W_sz / sampling_rate)
    gy = ((2.0 * jnp.arange(H_sz, dtype=jnp.float32) + 1.0) / H_sz - 1.0) \
        * (0.5 * H_sz / sampling_rate)
    grids = jnp.stack([jnp.tile(gx[None, :], (H_sz, 1)),
                       jnp.tile(gy[:, None], (1, W_sz))], axis=-1)      # (H, W, 2)

    x = jnp.einsum("hwk,bck->bhwc", grids, freqs_b)
    x = x + phases_b[:, None, None, :]
    x = jnp.sin(x * (2.0 * np.pi)) * np.exp(1.0 - 1.0 / density)
    x = x * amps[:, None, None, :]
    x = x @ (weight / np.sqrt(FC)).T
    x = jnp.transpose(x, (0, 3, 1, 2))
    return (x * np.exp(0.5)).astype(w.dtype)


# ----------------------------------------------------------------------------
if __name__ == "__main__":
    w_dim, channels, freq_channels = 32, 16, 16
    size, sampling_rate, bandwidth = 16, 16.0, 2.0
    batch = 2

    key = jax.random.PRNGKey(0)
    pkey, wkey = jax.random.split(key)
    params = init_params(pkey, w_dim=w_dim, freq_channels=freq_channels,
                         channels=channels, bandwidth=bandwidth)
    w = jax.random.normal(wkey, (batch, w_dim), dtype=jnp.float32)

    out = synthesis_input_forward(w, params, size=size,
                                  sampling_rate=sampling_rate,
                                  bandwidth=bandwidth)
    out = jax.block_until_ready(out)

    assert out.shape == (batch, channels, size, size)
    assert out.dtype == w.dtype

    ref = _reference_forward(w, params, size=size,
                             sampling_rate=sampling_rate, bandwidth=bandwidth)
    # bf16 MXU operands (f32 accumulation) vs. the f32 reference -> looser tol.
    np.testing.assert_allclose(np.asarray(out), np.asarray(ref),
                               rtol=3e-2, atol=3e-2)

    print("KERNEL_OK")
</pallas_src>

<mosaic_0001>
module attributes {stable_mosaic.version = 11 : i64} {
  func.func @_synth_input_kernel(%arg0: i32, %arg1: i32, %arg2: memref<2x256xf32, #tpu.memory_space<vmem>>, %arg3: memref<1x16x3xf32, #tpu.memory_space<vmem>>, %arg4: memref<1x16x16xbf16, #tpu.memory_space<vmem>>, %arg5: memref<1x16x256xf32, #tpu.memory_space<vmem>>) attributes {dimension_semantics = [#tpu.dimension_semantics<parallel>, #tpu.dimension_semantics<parallel>], iteration_bounds = array<i64: 2, 1>, scalar_prefetch = 0 : i64, scratch_operands = 0 : i64, tpu.core_type = #tpu.core_type<tc>, window_params = [{transform_indices = @transform_0, window_bounds = array<i64: 2, 256>}, {transform_indices = @transform_1, window_bounds = array<i64: 1, 16, 3>}, {transform_indices = @transform_2, window_bounds = array<i64: 1, 16, 16>}, {transform_indices = @transform_3, window_bounds = array<i64: 1, 16, 256>}]} {
    %c0 = arith.constant 0 : index
    %c0_0 = arith.constant 0 : index
    %0 = vector.load %arg2[%c0, %c0_0] : memref<2x256xf32, #tpu.memory_space<vmem>>, vector<1x256xf32>
    %c1 = arith.constant 1 : index
    %c0_1 = arith.constant 0 : index
    %1 = vector.load %arg2[%c1, %c0_1] : memref<2x256xf32, #tpu.memory_space<vmem>>, vector<1x256xf32>
    %c0_2 = arith.constant 0 : index
    %c0_3 = arith.constant 0 : index
    %c0_4 = arith.constant 0 : index
    %2 = vector.load %arg3[%c0_2, %c0_3, %c0_4] : memref<1x16x3xf32, #tpu.memory_space<vmem>>, vector<1x16x1xf32>
    %3 = vector.shape_cast %2 : vector<1x16x1xf32> to vector<16x1xf32>
    %c0_5 = arith.constant 0 : index
    %c0_6 = arith.constant 0 : index
    %c1_7 = arith.constant 1 : index
    %4 = vector.load %arg3[%c0_5, %c0_6, %c1_7] : memref<1x16x3xf32, #tpu.memory_space<vmem>>, vector<1x16x1xf32>
    %5 = vector.shape_cast %4 : vector<1x16x1xf32> to vector<16x1xf32>
    %c0_8 = arith.constant 0 : index
    %c0_9 = arith.constant 0 : index
    %c2 = arith.constant 2 : index
    %6 = vector.load %arg3[%c0_8, %c0_9, %c2] : memref<1x16x3xf32, #tpu.memory_space<vmem>>, vector<1x16x1xf32>
    %7 = vector.shape_cast %6 : vector<1x16x1xf32> to vector<16x1xf32>
    %8 = vector.broadcast %3 : vector<16x1xf32> to vector<16x256xf32>
    %9 = vector.broadcast %0 : vector<1x256xf32> to vector<16x256xf32>
    %10 = arith.mulf %8, %9 : vector<16x256xf32>
    %11 = vector.broadcast %5 : vector<16x1xf32> to vector<16x256xf32>
    %12 = vector.broadcast %1 : vector<1x256xf32> to vector<16x256xf32>
    %13 = arith.mulf %11, %12 : vector<16x256xf32>
    %14 = arith.addf %10, %13 : vector<16x256xf32>
    %15 = vector.broadcast %7 : vector<16x1xf32> to vector<16x256xf32>
    %16 = arith.addf %14, %15 : vector<16x256xf32>
    %17 = math.sin %16 : vector<16x256xf32>
    %18 = arith.truncf %17 : vector<16x256xf32> to vector<16x256xbf16>
    %c0_10 = arith.constant 0 : index
    %c0_11 = arith.constant 0 : index
    %c0_12 = arith.constant 0 : index
    %19 = vector.load %arg4[%c0_10, %c0_11, %c0_12] : memref<1x16x16xbf16, #tpu.memory_space<vmem>>, vector<1x16x16xbf16>
    %20 = vector.shape_cast %19 : vector<1x16x16xbf16> to vector<16x16xbf16>
    %cst = arith.constant dense<0.000000e+00> : vector<16x256xf32>
    %21 = tpu.matmul %20, %18, %cst {dimension_numbers = #tpu.dot_dimension_numbers<[1], [0], [0], [1], [0, 0, 1, 1], [], []>} : vector<16x16xbf16>, vector<16x256xbf16>, vector<16x256xf32> -> vector<16x256xf32>
    %c0_13 = arith.constant 0 : index
    %c0_14 = arith.constant 0 : index
    %c0_15 = arith.constant 0 : index
    %22 = vector.load %arg5[%c0_13, %c0_14, %c0_15] : memref<1x16x256xf32, #tpu.memory_space<vmem>>, vector<1x16x256xf32>
    %23 = vector.shape_cast %22 : vector<1x16x256xf32> to vector<16x256xf32>
    %24 = vector.shape_cast %21 : vector<16x256xf32> to vector<1x16x256xf32>
    tpu.vector_store %arg5[%c0_13, %c0_14, %c0_15], %24 {strides = array<i32>} : memref<1x16x256xf32, #tpu.memory_space<vmem>>, vector<1x16x256xf32>,
    return
  }
  func.func @transform_0(%arg0: i32, %arg1: i32) -> (i32, i32) {
    %c0_i32 = arith.constant 0 : i32
    %c0_i32_0 = arith.constant 0 : i32
    return %c0_i32, %arg1 : i32, i32
  }
  func.func @transform_1(%arg0: i32, %arg1: i32) -> (i32, i32, i32) {
    %c0_i32 = arith.constant 0 : i32
    %c0_i32_0 = arith.constant 0 : i32
    %c0_i32_1 = arith.constant 0 : i32
    return %arg0, %c0_i32, %c0_i32_0 : i32, i32, i32
  }
  func.func @transform_2(%arg0: i32, %arg1: i32) -> (i32, i32, i32) {
    %c0_i32 = arith.constant 0 : i32
    %c0_i32_0 = arith.constant 0 : i32
    %c0_i32_1 = arith.constant 0 : i32
    return %arg0, %c0_i32, %c0_i32_0 : i32, i32, i32
  }
  func.func @transform_3(%arg0: i32, %arg1: i32) -> (i32, i32, i32) {
    %c0_i32 = arith.constant 0 : i32
    %c0_i32_0 = arith.constant 0 : i32
    return %arg0, %c0_i32, %arg1 : i32, i32, i32
  }
}

</mosaic_0001>

<bundles_post_ra>
// kernel: tpu_custom_call.1
= control target key start
LH: loop header
LB: loop body
LE: loop exit
PB: predicated region body
PF: predicated region fallthrough
CT: control target
= control target key end

     0   :  { %8 = vsyncpa [#allocation3], 0  ;;  %s1585_s0 = inlined_call_operand.vmem [shape: f32[2,256], index: 0, kind: input, shape index: {}]   ;;  %s1586_s1 = inlined_call_operand.vmem [shape: f32[2,16,3], index: 1, kind: input, shape index: {}]   ;;  %s1587_s2 = inlined_call_operand.vmem [shape: bf16[2,16,16], index: 2, kind: input, shape index: {}]   ;;  %s1588_s3 = inlined_call_operand.hbm [shape: f32[2,16,256], index: 3, kind: output, shape index: {}]  }
   0x1   :  { %10 = vsyncpa [#allocation3 + $0x1], 0  ;;  %s1141_s12 = smov 0   ;;  %s1143_s13 = smov 0  }
   0x2   :  { %s1145_s14 = smov 0   ;;  %s1147_s15 = smov 0  }
   0x3   :  { %s1149_s16 = smov 0   ;;  %s1151_s17 = smov 0  }
   0x4 LB: > { %s888_s18 = sadd.s32 4294967295, %s1107_s17   ;;  %s889_s19 = sadd.s32 4294967294, %s1107_s17   ;;  %s1107_s17 = sphi %s1151_s17, %s16_s17   ;;  %s1103_s16 = sphi %s1149_s16, %s1603_s16   ;;  %s1099_s15 = sphi %s1147_s15, %s1602_s15   ;;  %s1095_s14 = sphi %s1145_s14, %s1601_s14   ;;  %s1091_s13 = sphi %s1143_s13, %s1600_s13   ;;  %s1087_s12 = sphi %s1141_s12, %s1599_s12  }
   0x5   : > { %s28_s20 = sadd.s32 1, %s1103_s16  ;;  %s115_s21 = sadd.s32 1, %s1095_s14 }
   0x6   : > { %p30_p0 = scmp.ge.s32.totalorder %s28_s20, 2  ;;  %p125_p1 = scmp.ne.s32.totalorder %s1095_s14, %s1091_s13 }
   0x7   : > { %p126_p2 = scmp.eq.s32.totalorder %s888_s18, 1  ;;  %p131_p3 = scmp.ne.s32.totalorder %s1091_s13, %s1087_s12 }
   0x8   : > { %s1605_s20 = smov (%p30_p0, %s28_s20), 0  ;;  %p132_p5 = scmp.eq.s32.totalorder %s889_s19, 1 }
   0x9   : > { %p1181_p4 = por %p126_p2, %p125_p1  ;;  %s110_s23 = ssub.s32 %s1103_s16, %s1605_s20 }
   0xa   : > { %p893_p6 = scmp.ge.s32.totalorder %s1107_s17, 1  ;;  %p113_p7 = scmp.eq.s32.totalorder %s110_s23, 0 }
   0xb   : > { %p1188_p8 = por %p132_p5, %p131_p3  ;;  %p175_p9 = scmp.lt.s32.totalorder %s1107_s17, 3 }
   0xc   : > { %s1194_s25 = scalar_select %p113_p7, %s1095_s14, %s115_s21  }
   0xd   : > { %p176_p10 = pnand %p893_p6, %p175_p9 }
   0xe   : > { %p215_p11 = scmp.lt.s32.totalorder (!%p176_p10), %s1099_s15, 1  ;;  %v1109_v0 = vmov (!%p176_p10), 1   ;;  %v1110_v1 = vmov (!%p176_p10), 0   ;;  %v1111_v4 = vmov (!%p176_p10), 2   ;;  %v243_v5 = vlaneseq (!%p176_p10)  ;;  %s206_s18 = sand.u32 (!%p176_p10), 1, %s1091_s13  }
   0xf   : > { %179 = sbr.rel (%p176_p10) target bundleno = 520 (0x208), region = 32  ;;  %1009 = vset.pattern.permute.xlu1 (!%p176_p10), %v1109_v0  ;;  %1008 = vset.pattern.permute.xlu0 (!%p176_p10), %v1110_v1  ;;  %v899_v9 = vld [vmem:[%s1585_s0 + $0x1] ss:$2 sm:$0x3] (!%p176_p10)  ;;  %s894_s19 = sshll.u32 (!%p176_p10), %s206_s18, 5 }
  0x10   : > { %757 = vmatprep.mubr.bf16.mxu0 (!%p176_p10), %v1110_v1  ;;  %v244_v6 = vshrl.u32 (!%p176_p10), %v243_v5, 7  ;;  %v227_v10 = vld [vmem:[%s1585_s0] ss:$2 sm:$0x3] (!%p176_p10)  ;;  %s208_s21 = scalar_lea.vmem (!%p176_p10), [#allocation2], %s894_s19  ;;  %s1539_s30 = scalar_lea.sflag (!%p176_p10), [#allocation3], %s206_s18 }
  0x11   : > { %s788_s23 = sshll.u32 (!%p176_p10), %s208_s21, 4  ;;  %s1532_s23 = int_to_ptr.vmem [resolvable:$true] %s788_s23 }
  0x12   : > { %v245_v7 = vsub.s32 (!%p176_p10), 0, %v244_v6  ;;  %v249_v8 = vsub.s32 (!%p176_p10), 1, %v244_v6  ;;  %v1114_v6 = vmov (!%p176_p10), 2131351028  }
  0x14   : > { %v269_v11 = vrot.slane (!%p176_p10), %v899_v9, %v245_v7  ;;  %v273_v12 = vrot.slane (!%p176_p10), %v899_v9, %v249_v8  ;;  %v246_v14 = vrot.slane (!%p176_p10), %v227_v10, %v245_v7  ;;  %v250_v15 = vrot.slane (!%p176_p10), %v227_v10, %v249_v8 }
  0x15   : > { %v1115_v10 = vmov (!%p176_p10), 2102212464  }
  0x16   : > { %s216_s26 = scalar_select %p215_p11, %s1099_s15, 1 }
  0x18   : > { %s923_s27 = sshll.u32 %s216_s26, 4  ;;  %s924_s28 = sshll.u32 %s216_s26, 3 }
  0x19   : > { %s219_s4 = scalar_lea.vmem %s1586_s1, %s923_s27  ;;  %s1204_s7 = scalar_lea.vmem %s1587_s2, %s924_s28 }
  0x1a   : > { %v230_v2 = vld [vmem:[%s219_s4] sm:$0xff]  ;;  %v231_v3 = vld [vmem:[%s219_s4 + $0x8] sm:$0xff]  ;;  %s925_s26 = sshll.u32 %s1099_s15, 9  ;;  %s1029_s15 = scalar_lea.vmem %s1532_s23, 512 }
  0x1b   : > { %258 = vperm.xlu1 %1009, %v230_v2   ;;  %234 = vperm.xlu0 %1008, %v230_v2   ;;  %s1537_s29 = scalar_lea.hbm %s1588_s3, %s925_s26  ;;  %p1030_p12 = scmp.ne.s32.totalorder %s1532_s23, %s1029_s15 }
  0x1c   : > { %s1118_s4 = smov [#allocation2]  }
  0x1d   : > { %p1031_p13 = pnand %p1030_p12, %p1181_p4  ;;  %s1033_s5 = sshll.u32 %s1118_s4, 4  ;;  %s1034_s5 = int_to_ptr.vmem [resolvable:$false] %s1033_s5 }
  0x1e   : > { %s1035_s6 = scalar_lea.vmem %s1034_s5, 1024  ;;  %p1036_p1 = scmp.lt.s32.totalorder %s1532_s23, %s1034_s5 }
  0x1f   : > { %262 = vperm.xlu1 %1009, %v231_v3   ;;  %239 = vperm.xlu0 %1008, %v231_v3   ;;  %p1032_p0 = pneg %p1031_p13  ;;  %p1037_p2 = scmp.lt.s32.totalorder %s1035_s6, %s1029_s15 }
  0x21   : > { %p1038_p3 = por %p1037_p2, %p1036_p1 }
  0x23   : > { %1011 = vset.pattern.permute.xlu1 %v1111_v4  ;;  %1010 = vset.pattern.permute.xlu0 %v1111_v4  ;;  %v1113_v4 = vmov 2475754826   ;;  %p1039_p5 = pnand %p1038_p3, %p1032_p0 }
  0x24   : > { %289 = vperm.xlu1 %1011, %v231_v3   ;;  %285 = vperm.xlu0 %1010, %v230_v2   ;;  %v1112_v2 = vmov 683565275  }
  0x9a   : > { %v259_v13 = vpop.permute.xlu1 %258  ;;  %v235_v16 = vpop.permute.xlu0 %234 }
  0x9b   : > { %v276_v17 = vmul.f32 %v269_v11, %v259_v13  ;;  %v277_v18 = vmul.f32 %v273_v12, %v259_v13  ;;  %v253_v19 = vmul.f32 %v246_v14, %v235_v16  ;;  %v254_v20 = vmul.f32 %v250_v15, %v235_v16 }
  0x9c   : > { %v1116_v13 = vmov 920167782   ;;  %v1117_v16 = vmov 1326507024  }
  0x9d   : > { %v280_v29 = vadd.f32 %v276_v17, %v253_v19  ;;  %v281_v30 = vadd.f32 %v277_v18, %v254_v20 }
  0x9e   : > { %v263_v21 = vpop.permute.xlu1 %262  ;;  %v240_v22 = vpop.permute.xlu0 %239 }
  0x9f   : > { %v278_v23 = vmul.f32 %v269_v11, %v263_v21  ;;  %v279_v24 = vmul.f32 %v273_v12, %v263_v21  ;;  %v255_v25 = vmul.f32 %v246_v14, %v240_v22  ;;  %v256_v26 = vmul.f32 %v250_v15, %v240_v22 }
  0xa1   : > { %v282_v27 = vadd.f32 %v278_v23, %v255_v25  ;;  %v283_v28 = vadd.f32 %v279_v24, %v256_v26 }
  0xa3   : > { %v290_v31 = vpop.permute.xlu1 %289  ;;  %v286_v32 = vpop.permute.xlu0 %285 }
  0xa4   : > { %v1212_v33 = vadd.f32 %v290_v31, %v282_v27  ;;  %v1214_v34 = vadd.f32 %v290_v31, %v283_v28  ;;  %v1216_v35 = vadd.f32 %v286_v32, %v280_v29  ;;  %v1218_v36 = vadd.f32 %v286_v32, %v281_v30 }
  0xa6   : > { %v504_v37 = vand.u32 2147483647, %v1212_v33  ;;  %v507_v38 = vand.u32 2139095040, %v1212_v33  ;;  %v611_v39 = vand.u32 2139095040, %v1214_v34  ;;  %v299_v40 = vand.u32 2139095040, %v1216_v35 }
  0xa7   : > { %v403_v41 = vand.u32 2139095040, %v1218_v36  ;;  %v296_v44 = vand.u32 2147483647, %v1216_v35  ;;  %v400_v54 = vand.u32 2147483647, %v1218_v36 }
  0xa8   : > { %v508_v42 = vshrl.u32 %v507_v38, 23  ;;  %v612_v43 = vshrl.u32 %v611_v39, 23  ;;  %v300_v45 = vshrl.u32 %v299_v40, 23  ;;  %v511_v48 = vand.u32 8388607, %v504_v37 }
  0xa9   : > { %v404_v46 = vshrl.u32 %v403_v41, 23  ;;  %v1230_v53 = vand.u32 8388607, %v296_v44  ;;  %v1236_v63 = vand.u32 8388607, %v400_v54 }
  0xaa   : > { %v908_v47 = vadd.s32 4294967169, %v508_v42  ;;  %v912_v49 = vadd.s32 4294967169, %v612_v43  ;;  %v900_v50 = vadd.s32 4294967169, %v300_v45  ;;  %v512_v55 = vor.u32 8388608, %v511_v48 }
  0xab   : > { %v904_v51 = vadd.s32 4294967169, %v404_v46  ;;  %v304_v62 = vor.u32 8388608, %v1230_v53  ;;  %v608_v53 = vand.u32 2147483647, %v1214_v34 }
  0xac   : > { %v514_v52 = vadd.s32 1, %v908_v47  ;;  %v618_v56 = vadd.s32 1, %v912_v49  ;;  %v306_v57 = vadd.s32 1, %v900_v50  ;;  %v1238_v1 = vshll.u32 %v512_v55, 8 }
  0xad   : > { %v410_v59 = vadd.s32 1, %v904_v51  ;;  %v1265_v51 = vshll.u32 %v304_v62, 8 }
  0xae   : > { %vm515_vm0 = vcmp.gt.s32.totalorder %v514_v52, 0  ;;  %vm619_vm1 = vcmp.gt.s32.totalorder %v618_v56, 0  ;;  %vm307_vm2 = vcmp.gt.s32.totalorder %v306_v57, 0 }
  0xaf   : > { %v516_v58 = vsel %vm515_vm0, %v514_v52, 0  ;;  %vm411_vm3 = vcmp.gt.s32.totalorder %v410_v59, 0  ;;  %v620_v31 = vsel %vm619_vm1, %v618_v56, 0  ;;  %v308_v39 = vsel %vm307_vm2, %v306_v57, 0 }
  0xb0   : > { %v518_v60 = vand.u32 31, %v516_v58  ;;  %v517_v61 = vshrl.u32 %v516_v58, 5  ;;  %v412_v43 = vsel %vm411_vm3, %v410_v59, 0  ;;  %v310_v49 = vand.u32 31, %v308_v39 }
  0xb1   : > { %v1263_v50 = vand.u32 31, %v620_v31  ;;  %v408_v52 = vor.u32 8388608, %v1236_v63  ;;  %v309_v56 = vshrl.u32 %v308_v39, 5  ;;  %v1270_v58 = vand.u32 31, %v412_v43 }
  0xb2   : > { %v519_v0 = vsub.s32 32, %v518_v60  ;;  %v521_v3 = vshll.u32 %v1112_v2, %v518_v60  ;;  %v524_v5 = vshll.u32 %v1113_v4, %v518_v60  ;;  %v527_v7 = vshll.u32 %v1114_v6, %v518_v60 }
  0xb3   : > { %v530_v12 = vshll.u32 %v1115_v10, %v518_v60  ;;  %v533_v15 = vshll.u32 %v1116_v13, %v518_v60  ;;  %vm536_vm4 = vcmp.lt.s32.totalorder %v517_v61, 1  ;;  %vm538_vm5 = vcmp.lt.s32.totalorder %v517_v61, 3 }
  0xb4   : > { %v522_v8 = vshrl.u32 %v1113_v4, %v519_v0  ;;  %v525_v9 = vshrl.u32 %v1114_v6, %v519_v0  ;;  %v528_v11 = vshrl.u32 %v1115_v10, %v519_v0  ;;  %v531_v14 = vshrl.u32 %v1116_v13, %v519_v0 }
  0xb5   : > { %v534_v17 = vshrl.u32 %v1117_v16, %v519_v0  ;;  %v520_v18 = vshrl.u32 %v1112_v2, %v519_v0  ;;  %vm539_vm6 = vcmp.lt.s32.totalorder %v517_v61, 4  ;;  %vm537_vm7 = vcmp.lt.s32.totalorder %v517_v61, 2 }
  0xb6   : > { %v523_v19 = vor.u32 %v522_v8, %v521_v3  ;;  %v526_v20 = vor.u32 %v525_v9, %v524_v5  ;;  %v529_v21 = vor.u32 %v528_v11, %v527_v7  ;;  %v532_v22 = vor.u32 %v531_v14, %v530_v12 }
  0xb7   : > { %v535_v23 = vor.u32 %v534_v17, %v533_v15  ;;  %v311_v57 = vsub.s32 32, %v310_v49  ;;  %v313_v60 = vshll.u32 %v1112_v2, %v310_v49  ;;  %v316_v61 = vshll.u32 %v1113_v4, %v310_v49 }
  0xb8   : > { %v540_v24 = vsel %vm536_vm4, %v520_v18, %v523_v19  ;;  %v541_v25 = vsel %vm539_vm6, %v529_v21, 2102212464  ;;  %v544_v26 = vsel %vm536_vm4, %v523_v19, %v526_v20  ;;  %v548_v27 = vsel %vm536_vm4, %v526_v20, %v529_v21 }
  0xb9   : > { %v542_v28 = vsel %vm538_vm5, %v526_v20, %v541_v25  ;;  %v545_v29 = vsel %vm539_vm6, %v532_v22, 920167782  ;;  %v549_v30 = vsel %vm539_vm6, %v535_v23, 1326507024  ;;  %v314_v62 = vshrl.u32 %v1113_v4, %v311_v57 }
  0xba   : > { %v546_v32 = vsel %vm538_vm5, %v529_v21, %v545_v29  ;;  %v550_v38 = vsel %vm538_vm5, %v532_v22, %v549_v30  ;;  %v543_v40 = vsel %vm537_vm7, %v540_v24, %v542_v28  ;;  %v317_v0 = vshrl.u32 %v1114_v6, %v311_v57 }
  0xbb   : > { %v547_v41 = vsel %vm537_vm7, %v544_v26, %v546_v32  ;;  %v551_v42 = vsel %vm537_vm7, %v548_v27, %v550_v38  ;;  %v559_v55 = vmul.u32 %v1238_v1, %v543_v40  ;;  %v319_v3 = vshll.u32 %v1114_v6, %v310_v49 }
  0xbc   : > { %v1255_v45 = vmul.u32.u64.low %v1238_v1, %v551_v42  ;;  %v1256_v46 = vmul.u32.u64.high %v1238_v1, %v551_v42, %v1255_v45  ;;  %v1259_v47 = vmul.u32.u64.low %v1238_v1, %v547_v41  ;;  %v1260_v48 = vmul.u32.u64.high %v1238_v1, %v547_v41, %v1259_v47 }
  0xbd   : > { %v320_v1 = vshrl.u32 %v1115_v10, %v311_v57  ;;  %v312_v7 = vshrl.u32 %v1112_v2, %v311_v57  ;;  %v322_v8 = vshll.u32 %v1115_v10, %v310_v49  ;;  %v323_v9 = vshrl.u32 %v1116_v13, %v311_v57 }
  0xbe   : > { %vm561_vm8 = vc.u32 %v1256_v46, %v1259_v47  ;;  %v562_v59 = vadd.s32 1, %v1260_v48  ;;  %v315_v12 = vor.u32 %v314_v62, %v313_v60  ;;  %v318_v14 = vor.u32 %v317_v0, %v316_v61 }
  0xbf   : > { %v321_v15 = vor.u32 %v320_v1, %v319_v3  ;;  %v324_v17 = vor.u32 %v323_v9, %v322_v8  ;;  %v325_v18 = vshll.u32 %v1116_v13, %v310_v49  ;;  %v326_v19 = vshrl.u32 %v1117_v16, %v311_v57 }
  0xc0   : > { %v563_v5 = vsel %vm561_vm8, %v562_v59, %v1260_v48  ;;  %vm328_vm9 = vcmp.lt.s32.totalorder %v309_v56, 1  ;;  %vm329_vm10 = vcmp.lt.s32.totalorder %v309_v56, 2  ;;  %vm330_vm11 = vcmp.lt.s32.totalorder %v309_v56, 3 }
  0xc1   : > { %v564_v11 = vadd.s32 %v563_v5, %v559_v55  ;;  %vm331_vm12 = vcmp.lt.s32.totalorder %v309_v56, 4  ;;  %v327_v21 = vor.u32 %v326_v19, %v325_v18  ;;  %v336_v23 = vsel %vm328_vm9, %v315_v12, %v318_v14 }
  0xc2   : > { %v333_v22 = vsel %vm331_vm12, %v321_v15, 2102212464  ;;  %v337_v24 = vsel %vm331_vm12, %v324_v17, 920167782  ;;  %v332_v26 = vsel %vm328_vm9, %v312_v7, %v315_v12  ;;  %v340_v28 = vsel %vm328_vm9, %v318_v14, %v321_v15 }
  0xc3   : > { %v565_v20 = vadd.s32 536870912, %v564_v11  ;;  %v338_v27 = vsel %vm330_vm11, %v321_v15, %v337_v24  ;;  %v334_v29 = vsel %vm330_vm11, %v318_v14, %v333_v22  ;;  %v341_v32 = vsel %vm331_vm12, %v327_v21, 1326507024 }
  0xc4   : > { %v339_v30 = vsel %vm329_vm10, %v336_v23, %v338_v27  ;;  %v415_v38 = vsub.s32 32, %v1270_v58  ;;  %v342_v40 = vsel %vm330_vm11, %v324_v17, %v341_v32  ;;  %v1297_v45 = vshrl.u32 %v620_v31, 5 }
  0xc5   : > { %v1287_v25 = vshrl.u32 %v565_v20, 30  ;;  %v1293_v41 = vmul.u32.u64.low %v1265_v51, %v339_v30  ;;  %v1294_v42 = vmul.u32.u64.high %v1265_v51, %v339_v30, %v1293_v41  ;;  %v1300_v48 = vsub.s32 32, %v1263_v50 }
  0xc6   : > { %v343_v49 = vsel %vm329_vm10, %v340_v28, %v342_v40  ;;  %v427_v55 = vshrl.u32 %v1116_v13, %v415_v38  ;;  %v1310_v61 = vshrl.u32 %v412_v43, 5  ;;  %v335_v62 = vsel %vm329_vm10, %v332_v26, %v334_v29 }
  0xc7   : > { %v567_v39 = vshll.u32 %v1287_v25, 30  ;;  %v1307_v59 = vmul.u32.u64.low %v1265_v51, %v343_v49  ;;  %v1308_v60 = vmul.u32.u64.high %v1265_v51, %v343_v49, %v1307_v59  ;;  %v426_v31 = vshll.u32 %v1115_v10, %v1270_v58 }
  0xc8   : > { %v429_v0 = vshll.u32 %v1116_v13, %v1270_v58  ;;  %v430_v3 = vshrl.u32 %v1117_v16, %v415_v38  ;;  %v354_v5 = vadd.s32 1, %v1294_v42  ;;  %v417_v7 = vshll.u32 %v1112_v2, %v1270_v58 }
  0xc9   : > { %v1304_v57 = vsub.s32 %v564_v11, %v567_v39  ;;  %v418_v43 = vshrl.u32 %v1113_v4, %v415_v38  ;;  %v428_v8 = vor.u32 %v427_v55, %v426_v31  ;;  %v420_v9 = vshll.u32 %v1113_v4, %v1270_v58 }
  0xca   : > { %v431_v56 = vor.u32 %v430_v3, %v429_v0  ;;  %v421_v11 = vshrl.u32 %v1114_v6, %v415_v38  ;;  %v351_v14 = vmul.u32 %v1265_v51, %v335_v62  ;;  %vm353_vm13 = vc.u32 %v1308_v60, %v1293_v41 }
  0xcb   : > { %v570_v1 = vsub.s32 0, %v1304_v57  ;;  %v419_v15 = vor.u32 %v418_v43, %v417_v7  ;;  %v634_v17 = vshll.u32 %v1115_v10, %v1263_v50  ;;  %v355_v18 = vsel %vm353_vm13, %v354_v5, %v1294_v42 }
  0xcc   : > { %v422_v19 = vor.u32 %v421_v11, %v420_v9  ;;  %v448_v20 = vshll.u32 %v408_v52, 8  ;;  %v356_v21 = vadd.s32 %v355_v18, %v351_v14  ;;  %vm435_vm14 = vcmp.lt.s32.totalorder %v1310_v61, 4 }
  0xcd   : > { %v909_v12 = vmin.u32 %v570_v1, %v1304_v57  ;;  %v423_v22 = vshll.u32 %v1114_v6, %v1270_v58  ;;  %v424_v51 = vshrl.u32 %v1115_v10, %v415_v38  ;;  %v441_v24 = vsel %vm435_vm14, %v428_v8, 920167782 }
  0xce   : > { %v445_v26 = vsel %vm435_vm14, %v431_v56, 1326507024  ;;  %vm432_vm15 = vcmp.lt.s32.totalorder %v1310_v61, 1  ;;  %v635_v63 = vshrl.u32 %v1116_v13, %v1300_v48  ;;  %v357_v52 = vadd.s32 536870912, %v356_v21 }
  0xcf   : > { %v572_v23 = vclz %v909_v12  ;;  %v425_v27 = vor.u32 %v424_v51, %v423_v22  ;;  %v440_v28 = vsel %vm432_vm15, %v419_v15, %v422_v19  ;;  %v638_v58 = vshrl.u32 %v1117_v16, %v1300_v48 }
  0xd0   : > { %v416_v29 = vshrl.u32 %v1112_v2, %v415_v38  ;;  %vm433_vm0 = vcmp.lt.s32.totalorder %v1310_v61, 2  ;;  %vm434_vm1 = vcmp.lt.s32.totalorder %v1310_v61, 3  ;;  %v1353_v30 = vshrl.u32 %v357_v52, 30 }
  0xd1   : > { %v437_v32 = vsel %vm435_vm14, %v425_v27, 2102212464  ;;  %v442_v39 = vsel %vm434_vm1, %v425_v27, %v441_v24  ;;  %v446_v40 = vsel %vm434_vm1, %v428_v8, %v445_v26  ;;  %v910_v42 = vadd.s32 4294967294, %v572_v23 }
  0xd2   : > { %v637_v49 = vshll.u32 %v1116_v13, %v1263_v50  ;;  %v443_v16 = vsel %vm433_vm0, %v440_v28, %v442_v39  ;;  %v444_v38 = vsel %vm432_vm15, %v422_v19, %v425_v27  ;;  %v636_v55 = vor.u32 %v635_v63, %v634_v17 }
  0xd3   : > { %v359_v59 = vshll.u32 %v1353_v30, 30  ;;  %v436_v62 = vsel %vm432_vm15, %v416_v29, %v419_v15  ;;  %v626_v31 = vshrl.u32 %v1113_v4, %v1300_v48  ;;  %v438_v0 = vsel %vm434_vm1, %v422_v19, %v437_v32 }
  0xd4   : > { %v447_v3 = vsel %vm433_vm0, %v444_v38, %v446_v40  ;;  %v1370_v13 = vmul.u32.u64.low %v448_v20, %v443_v16  ;;  %v1371_v1 = vmul.u32.u64.high %v448_v20, %v443_v16, %v1370_v13  ;;  %v639_v5 = vor.u32 %v638_v58, %v637_v49 }
  0xd5   : > { %vm643_vm2 = vcmp.lt.s32.totalorder %v1297_v45, 4  ;;  %v1375_v7 = vsub.s32 %v356_v21, %v359_v59  ;;  %v615_v43 = vand.u32 8388607, %v608_v53  ;;  %vm911_vm3 = vcmp.lt.s32.totalorder %v910_v42, 0 }
  0xd6   : > { %v1379_v8 = vmul.u32.u64.low %v448_v20, %v447_v3  ;;  %v1380_v56 = vmul.u32.u64.high %v448_v20, %v447_v3, %v1379_v8  ;;  %v625_v9 = vshll.u32 %v1112_v2, %v1263_v50  ;;  %v439_v12 = vsel %vm433_vm0, %v436_v62, %v438_v0 }
  0xd7   : > { %v362_v11 = vsub.s32 0, %v1375_v7  ;;  %v628_v14 = vshll.u32 %v1113_v4, %v1263_v50  ;;  %v629_v15 = vshrl.u32 %v1114_v6, %v1300_v48  ;;  %v458_v17 = vadd.s32 1, %v1371_v1 }
  0xd8   : > { %v627_v18 = vor.u32 %v626_v31, %v625_v9  ;;  %v631_v19 = vshll.u32 %v1114_v6, %v1263_v50  ;;  %v632_v21 = vshrl.u32 %v1115_v10, %v1300_v48  ;;  %v649_v22 = vsel %vm643_vm2, %v636_v55, 920167782 }
  0xd9   : > { %v901_v61 = vmin.u32 %v362_v11, %v1375_v7  ;;  %v630_v51 = vor.u32 %v629_v15, %v628_v14  ;;  %v653_v4 = vsel %vm643_vm2, %v639_v5, 1326507024  ;;  %v455_v23 = vmul.u32 %v448_v20, %v439_v12 }
  0xda   : > { %vm457_vm4 = vc.u32 %v1380_v56, %v1370_v13  ;;  %v633_v24 = vor.u32 %v632_v21, %v631_v19  ;;  %v575_v26 = vsel %vm911_vm3, 0, %v910_v42  ;;  %vm640_vm5 = vcmp.lt.s32.totalorder %v1297_v45, 1 }
  0xdb   : > { %v364_v6 = vclz %v901_v61  ;;  %v459_v50 = vsel %vm457_vm4, %v458_v17, %v1371_v1  ;;  %v616_v63 = vor.u32 8388608, %v615_v43  ;;  %vm642_vm6 = vcmp.lt.s32.totalorder %v1297_v45, 3 }
  0xdc   : > { %v460_v10 = vadd.s32 %v459_v50, %v455_v23  ;;  %v648_v52 = vsel %vm640_vm5, %v627_v18, %v630_v51  ;;  %v650_v20 = vsel %vm642_vm6, %v633_v24, %v649_v22  ;;  %v580_v28 = vsub.s32 4294967266, %v575_v26 }
  0xdd   : > { %v902_v27 = vadd.s32 4294967294, %v364_v6  ;;  %vm641_vm7 = vcmp.lt.s32.totalorder %v1297_v45, 2  ;;  %v652_v29 = vsel %vm640_vm5, %v630_v51, %v633_v24  ;;  %v645_v32 = vsel %vm643_vm2, %v633_v24, 2102212464 }
  0xde   : > { %v461_v58 = vadd.s32 536870912, %v460_v10  ;;  %v651_v39 = vsel %vm641_vm7, %v648_v52, %v650_v20  ;;  %v654_v40 = vsel %vm642_vm6, %v636_v55, %v653_v4  ;;  %v656_v38 = vshll.u32 %v616_v63, 8 }
  0xdf   : > { %vm903_vm8 = vcmp.lt.s32.totalorder %v902_v27, 0  ;;  %v655_v16 = vsel %vm641_vm7, %v652_v29, %v654_v40  ;;  %v624_v62 = vshrl.u32 %v1112_v2, %v1300_v48  ;;  %v581_v31 = vadd.s32 127, %v580_v28 }
  0xe0   : > { %v367_v42 = vsel %vm903_vm8, 0, %v902_v27  ;;  %v1420_v49 = vshrl.u32 %v461_v58, 30  ;;  %v1427_v3 = vmul.u32.u64.low %v656_v38, %v655_v16  ;;  %v1428_v1 = vmul.u32.u64.high %v656_v38, %v655_v16, %v1427_v3 }
  0xe1   : > { %v372_v59 = vsub.s32 4294967266, %v367_v42  ;;  %v644_v55 = vsel %vm640_vm5, %v624_v62, %v627_v18  ;;  %v646_v5 = vsel %vm642_vm6, %v630_v51, %v645_v32  ;;  %v576_v12 = vsub.s32 32, %v575_v26 }
  0xe2   : > { %v463_v0 = vshll.u32 %v1420_v49, 30  ;;  %v1434_v43 = vmul.u32.u64.low %v656_v38, %v651_v39  ;;  %v1435_v8 = vmul.u32.u64.high %v656_v38, %v651_v39, %v1434_v43  ;;  %v368_v2 = vsub.s32 32, %v367_v42 }
  0xe3   : > { %v373_v9 = vadd.s32 127, %v372_v59  ;;  %v647_v14 = vsel %vm641_vm7, %v644_v55, %v646_v5  ;;  %v560_v15 = vadd.s32 %v1259_v47, %v1256_v46  ;;  %v582_v17 = vshll.u32 %v581_v31, 23 }
  0xe4   : > { %v464_v11 = vsub.s32 %v460_v10, %v463_v0  ;;  %vm665_vm9 = vc.u32 %v1428_v1, %v1434_v43  ;;  %v666_v18 = vadd.s32 1, %v1435_v8  ;;  %v352_v19 = vadd.s32 %v1293_v41, %v1308_v60 }
  0xe5   : > { %v374_v21 = vshll.u32 %v373_v9, 23  ;;  %v578_v61 = vshrl.u32 %v560_v15, %v576_v12  ;;  %v663_v51 = vmul.u32 %v656_v38, %v647_v14  ;;  %v577_v24 = vshll.u32 %v1304_v57, %v575_v26 }
  0xe6   : > { %v466_v48 = vsub.s32 0, %v464_v11  ;;  %v667_v4 = vsel %vm665_vm9, %v666_v18, %v1435_v8  ;;  %v370_v45 = vshrl.u32 %v352_v19, %v368_v2  ;;  %v583_v6 = vor.u32 4788187, %v582_v17 }
  0xe7   : > { %v668_v50 = vadd.s32 %v667_v4, %v663_v51  ;;  %v369_v46 = vshll.u32 %v1375_v7, %v367_v42  ;;  %v375_v47 = vor.u32 4788187, %v374_v21  ;;  %v579_v63 = vor.u32 %v578_v61, %v577_v24 }
  0xe8   : > { %v905_v22 = vmin.u32 %v466_v48, %v464_v11  ;;  %v584_v41 = vand.u32 2147483647, %v583_v6  ;;  %v456_v58 = vadd.s32 %v1370_v13, %v1380_v56  ;;  %vm506_vm11 = vcmp.lt.s32.totalorder %v1212_v33, 0 }
  0xe9   : > { %v669_v52 = vadd.s32 536870912, %v668_v50  ;;  %v371_v27 = vor.u32 %v370_v45, %v369_v46  ;;  %v376_v28 = vand.u32 2147483647, %v375_v47  ;;  %v586_v26 = vcvt.s32.f32 %v579_v63 }
  0xea   : > { %v468_v23 = vclz %v905_v22  ;;  %vm298_vm12 = vcmp.lt.s32.totalorder %v1216_v35, 0  ;;  %vm402_vm13 = vcmp.lt.s32.totalorder %v1218_v36, 0  ;;  %vm1464_vm15 = vcmp.le.f32.partialorder %v504_v37, 0.7853982 }
  0xeb   : > { %v1450_v20 = vshrl.u32 %v669_v52, 30  ;;  %v378_v7 = vcvt.s32.f32 %v371_v27  ;;  %v587_v16 = vmul.f32 %v586_v26, %v584_v41  ;;  %v664_v17 = vadd.s32 %v1434_v43, %v1428_v1 }
  0xec   : > { %v906_v10 = vadd.s32 4294967294, %v468_v23  ;;  %vm1472_vm0 = vcmp.le.f32.partialorder %v296_v44, 0.7853982  ;;  %vm1486_vm1 = vcmp.le.f32.partialorder %v400_v54, 0.7853982  ;;  %v486_v45 = vsub.s32 4, %v1420_v49 }
  0xed   : > { %v671_v32 = vshll.u32 %v1450_v20, 30  ;;  %v379_v59 = vmul.f32 %v378_v7, %v376_v28  ;;  %v588_v55 = vxor.u32 2147483648, %v587_v16  ;;  %v382_v24 = vsub.s32 4, %v1353_v30 }
  0xee   : > { %vm907_vm10 = vcmp.lt.s32.totalorder %v906_v10, 0  ;;  %v590_v54 = vsub.s32 4, %v1287_v25  ;;  %v487_v47 = vsel %vm402_vm13, %v486_v45, %v1420_v49  ;;  %v694_v28 = vsub.s32 4, %v1450_v20 }
  0xef   : > { %v471_v60 = vsel %vm907_vm10, 0, %v906_v10  ;;  %v672_v38 = vsub.s32 %v668_v50, %v671_v32  ;;  %v380_v8 = vxor.u32 2147483648, %v379_v59  ;;  %v383_v52 = vsel %vm298_vm12, %v382_v24, %v1353_v30 }
  0xf0   : > { %v472_v29 = vsub.s32 32, %v471_v60  ;;  %v476_v57 = vsub.s32 4294967266, %v471_v60  ;;  %v473_v39 = vshll.u32 %v464_v11, %v471_v60  ;;  %v589_v11 = vsel %vm506_vm11, %v588_v55, %v587_v16 }
  0xf1   : > { %v674_v0 = vsub.s32 0, %v672_v38  ;;  %v381_v48 = vsel %vm298_vm12, %v380_v8, %v379_v59  ;;  %v592_v21 = vsel %vm1464_vm15, %v1212_v33, %v589_v11  ;;  %v591_v27 = vsel %vm506_vm11, %v590_v54, %v1287_v25 }
  0xf2   : > { %v474_v40 = vshrl.u32 %v456_v58, %v472_v29  ;;  %v477_v42 = vadd.s32 127, %v476_v57  ;;  %v384_v1 = vsel %vm1472_vm0, %v1216_v35, %v381_v48  ;;  %1013 = vcosq.f32 %v592_v21 }
  0xf3   : > { %v913_v5 = vmin.u32 %v674_v0, %v672_v38  ;;  %1015 = vcosq.f32 %v384_v1  ;;  %v489_v41 = vsel %vm1486_vm1, 0, %v487_v47  ;;  %v385_v49 = vsel %vm1472_vm0, 0, %v383_v52 }
  0xf4   : > { %v475_v62 = vor.u32 %v474_v40, %v473_v39  ;;  %v478_v31 = vshll.u32 %v477_v42, 23  ;;  %1017 = vsinq.f32 %v384_v1  ;;  %v593_v58 = vsel %vm1464_vm15, 0, %v591_v27 }
  0xf5   : > { %v676_v9 = vclz %v913_v5  ;;  %1019 = vsinq.f32 %v592_v21  ;;  %v493_v30 = vadd.s32 3, %v489_v41  ;;  %vm1514_vm2 = vcmp.le.f32.partialorder %v608_v53, 0.7853982 }
  0xf6   : > { %v479_v3 = vor.u32 4788187, %v478_v31  ;;  %v482_v56 = vcvt.s32.f32 %v475_v62  ;;  %vm610_vm3 = vcmp.lt.s32.totalorder %v1214_v34, 0  ;;  %v389_v40 = vadd.s32 3, %v385_v49 }
  0xf7   : > { %v914_v2 = vadd.s32 4294967294, %v676_v9  ;;  %v695_v39 = vsel %vm610_vm3, %v694_v28, %v1450_v20  ;;  %v597_v42 = vadd.s32 3, %v593_v58  ;;  %v494_v53 = vand.u32 3, %v493_v30 }
  0xf8   : > { %v480_v13 = vand.u32 2147483647, %v479_v3  ;;  %v697_v31 = vsel %vm1514_vm2, 0, %v695_v39  ;;  %v390_v0 = vand.u32 3, %v389_v40  ;;  %vm388_vm15 = vweird.f32 %v1216_v35 }
  0xf9   : > { %vm915_vm14 = vcmp.lt.s32.totalorder %v914_v2, 0  ;;  %v598_v3 = vand.u32 3, %v597_v42  ;;  %v701_v9 = vadd.s32 3, %v697_v31  ;;  %vm496_vm4 = vcmp.eq.s32.totalorder %v494_v53, 0 }
  0xfa   : > { %v483_v12 = vmul.f32 %v482_v56, %v480_v13  ;;  %v679_v18 = vsel %vm915_vm14, 0, %v914_v2  ;;  %vm499_vm5 = vcmp.eq.s32.totalorder %v494_v53, 2  ;;  %vm392_vm6 = vcmp.eq.s32.totalorder %v390_v0, 0 }
  0xfb   : > { %v680_v22 = vsub.s32 32, %v679_v18  ;;  %v684_v61 = vsub.s32 4294967266, %v679_v18  ;;  %v681_v43 = vshll.u32 %v672_v38, %v679_v18  ;;  %vm395_vm7 = vcmp.eq.s32.totalorder %v390_v0, 2 }
  0xfc   : > { %v484_v14 = vxor.u32 2147483648, %v483_v12  ;;  %v1014_v29 = vpop.eup %1013  ;;  %vm600_vm8 = vcmp.eq.s32.totalorder %v598_v3, 0  ;;  %vm603_vm9 = vcmp.eq.s32.totalorder %v598_v3, 2  ;;  %vm391_vm10 = vcmp.lt.s32.totalorder %v390_v0, 2 }
  0xfd   : > { %v682_v51 = vshrl.u32 %v664_v17, %v680_v22  ;;  %v685_v4 = vadd.s32 127, %v684_v61  ;;  %v1016_v26 = vpop.eup %1015  ;;  %v604_v8 = vxor.u32 2147483648, %v1014_v29  ;;  %v702_v17 = vand.u32 3, %v701_v9 }
  0xfe   : > { %v485_v37 = vsel %vm402_vm13, %v484_v14, %v483_v12  ;;  %v1018_v32 = vpop.eup %1017  ;;  %v396_v5 = vxor.u32 2147483648, %v1016_v26  ;;  %vm599_vm11 = vcmp.lt.s32.totalorder %v598_v3, 2  ;;  %vm495_vm12 = vcmp.lt.s32.totalorder %v494_v53, 2 }
  0xff   : > { %v488_v23 = vsel %vm1486_vm1, %v1218_v36, %v485_v37  ;;  %v683_v6 = vor.u32 %v682_v51, %v681_v43  ;;  %v686_v50 = vshll.u32 %v685_v4, 23  ;;  %v1020_v16 = vpop.eup %1019  ;;  %v393_v55 = vxor.u32 2147483648, %v1018_v32 }
 0x100   : > { %1021 = vcosq.f32 %v488_v23  ;;  %v601_v20 = vxor.u32 2147483648, %v1020_v16  ;;  %v397_v11 = vsel %vm395_vm7, %v396_v5, %v1018_v32  ;;  %v605_v48 = vsel %vm603_vm9, %v604_v8, %v1020_v16 }
 0x101   : > { %v687_v46 = vor.u32 4788187, %v686_v50  ;;  %1023 = vsinq.f32 %v488_v23  ;;  %v690_v63 = vcvt.s32.f32 %v683_v6  ;;  %v394_v12 = vsel %vm392_vm6, %v1016_v26, %v393_v55  ;;  %v1012_v50 = vld [vmem:[%s1204_s7] sm:$0xff]  }
 0x102   : > { %v602_v2 = vsel %vm600_vm8, %v1014_v29, %v601_v20  ;;  %v398_v19 = vsel %vm391_vm10, %v394_v12, %v397_v11  ;;  %vm492_vm13 = vweird.f32 %v1218_v36  ;;  %vm707_vm14 = vcmp.eq.s32.totalorder %v702_v17, 2 }
 0x103   : > { %v688_v10 = vand.u32 2147483647, %v687_v46  ;;  %v606_v21 = vsel %vm599_vm11, %v602_v2, %v605_v48  ;;  %vm596_vm0 = vweird.f32 %v1212_v33  ;;  %vm704_vm1 = vcmp.eq.s32.totalorder %v702_v17, 0 }
 0x104   : > { %v399_v43 = vsel %vm388_vm15, nan, %v398_v19  ;;  %v607_v51 = vsel %vm596_vm0, nan, %v606_v21 }
 0x105   : > { %v691_v60 = vmul.f32 %v690_v63, %v688_v10  ;;  %v712_v24 = vpack.c.bf16 %v607_v51, %v399_v43 }
 0x107   : > { %v692_v57 = vxor.u32 2147483648, %v691_v60 }
 0x109   : > { %v693_v7 = vsel %vm610_vm3, %v692_v57, %v691_v60  ;;  %vm700_vm3 = vweird.f32 %v1214_v34 }
 0x10a   : > { %v696_v38 = vsel %vm1514_vm2, %v1214_v34, %v693_v7  ;;  %v1022_v59 = vpop.eup %1021  ;;  %vm703_vm2 = vcmp.lt.s32.totalorder %v702_v17, 2 }
 0x10b   : > { %1025 = vcosq.f32 %v696_v38  ;;  %v1024_v62 = vpop.eup %1023  ;;  %v500_v56 = vxor.u32 2147483648, %v1022_v59 }
 0x10c   : > { %1027 = vsinq.f32 %v696_v38  ;;  %v497_v13 = vxor.u32 2147483648, %v1024_v62 }
 0x10d   : > { %v501_v15 = vsel %vm499_vm5, %v500_v56, %v1024_v62 }
 0x10e   : > { %v498_v14 = vsel %vm496_vm4, %v1022_v59, %v497_v13  ;;  %vm721_vm4 = vcmask 130048  }
 0x10f   : > { %v502_v22 = vsel %vm495_vm12, %v498_v14, %v501_v15 }
 0x110   : > { %v503_v4 = vsel %vm492_vm13, nan, %v502_v22 }
 0x115   : > { %v1026_v18 = vpop.eup %1025 }
 0x116   : > { %v1028_v37 = vpop.eup %1027  ;;  %v708_v61 = vxor.u32 2147483648, %v1026_v18 }
 0x117   : > { %v705_v1 = vxor.u32 2147483648, %v1028_v37 }
 0x118   : > { %v709_v44 = vsel %vm707_vm14, %v708_v61, %v1028_v37 }
 0x119   : > { %v706_v45 = vsel %vm704_vm1, %v1026_v18, %v705_v1 }
 0x11a   : > { %v710_v36 = vsel %vm703_vm2, %v706_v45, %v709_v44 }
 0x11b   : > { %v711_v23 = vsel %vm700_vm3, nan, %v710_v36 }
 0x11c   : > { %v713_v6 = vpack.c.bf16 %v711_v23, %v503_v4 }
 0x11e   : > { %725 = vmatprep.subr.bf16.mxu0 %v713_v6 }
 0x11f   : > { %726 = vmatpush1.bf16.msra.mxu0 %v712_v24 }
 0x122   : > { %917 = vmatmul.mubr.msk.bf16.vlgmr.msra.gmra.mrb[0].mxu0 %vm721_vm4, %v1012_v50 }
 0x1f5   : > { %v759_v33 = vpop.f32.mrb[0].mxu0 }
 0x1f6   : > { %768 = vst [vmem:[%s208_s21] sm:$0xff] %v759_v33  ;;  %v761_v34 = vpop.f32.mrb[1].mxu0 }
 0x1f7   : > { %769 = vst [vmem:[%s208_s21 + $0x8] sm:$0xff] %v761_v34  ;;  %v763_v35 = vpop.f32.mrb[2].mxu0 }
 0x1f8   : > { %770 = vst [vmem:[%s208_s21 + $0x10] sm:$0xff] %v763_v35  ;;  %v765_v54 = vpop.f32.mrb[3].mxu0 }
 0x1f9   : > { %771 = vst [vmem:[%s208_s21 + $0x18] sm:$0xff] %v765_v54 }
 0x1fa   : > { %1042 = shalt.err (!%p1039_p5)
}
 0x1fb   : > { %s1043_s7 = scalar_lea.hbm %s1537_s29, 512  ;;  %s1047_s10 = scalar_lea.hbm %s1588_s3, 1024 }
 0x1fc   : > { %p1044_p6 = scmp.ne.s32.totalorder %s1537_s29, %s1043_s7  ;;  %p1048_p10 = scmp.lt.u32.totalorder %s1537_s29, %s1588_s3 }
 0x1fd   : > { %p1049_p11 = scmp.lt.u32.totalorder %s1047_s10, %s1043_s7  ;;  %p1051_p13 = scmp.lt.u32.totalorder %s1043_s7, %s1537_s29 }
 0x1fe   : > { %p1045_p7 = pnand %p1044_p6, %p1181_p4 }
 0x1ff   : > { %p1050_p12 = por %p1049_p11, %p1048_p10 }
 0x200   : > { %p1046_p9 = pneg %p1045_p7 }
 0x201   : > { %p1052_p0 = por %p1051_p13, %p1050_p12 }
 0x203   : > { %p1053_p1 = pnand %p1052_p0, %p1046_p9 }
 0x205   : > { %1056 = shalt.err (!%p1053_p1)
}
 0x206   : > { %s1119_s19 = smov 256   ;;  %s1120_s21 = smov 16  }
 0x207   : > { %942 = dma.vmem_to_hbm [thread:$0]  (%p1181_p4), %s1532_s23, 512, %s1537_s29, %s1539_s30, %s1119_s19, %s1119_s19, %s1120_s21  }
 0x208 PF: > { %p948_p2 = scmp.ge.s32.totalorder %s1107_s17, 2  ;;  %s803_s26 = sand.u32 1, %s1087_s12  }
 0x209   : > { %s804_s27 = scalar_lea.sflag [#allocation3], %s803_s26 }
 0x20a   : > { %p945_p3 = pnand %p948_p2, %p1188_p8 }
 0x20c   : > { %1082 = dma.done.wait (!%p945_p3), %s804_s27, 512  }
 0x20d   : > { %1084 = vsyncadd (!%p945_p3), %s804_s27, 4294966784  ;;  %s16_s17 = sadd.s32 1, %s1107_s17   ;;  %s1599_s12 = smov %s1091_s13 }
 0x20e   : > { %p13_p5 = scmp.ge.s32.totalorder %s16_s17, 4   ;;  %s1600_s13 = smov %s1095_s14 }
 0x20f   : > { %s1601_s14 = smov %s1194_s25  ;;  %s1602_s15 = smov %s1103_s16 }
 0x210   : > { %s1603_s16 = smov %s1605_s20  ;;  %15 = sbr.rel (!%p13_p5) target bundleno = 4 (0x4), region = 74 }
 0x217   :  { %809 = vsyncpa [#allocation3], 1 }
 0x218   :  { %811 = vsyncpa [#allocation3 + $0x1], 1 }

</bundles_post_ra>
